<compile_context>
chip_gen: v5e
topology: v5e:2x2
jax: 0.10.0
libtpu: 0.0.40
codegen_flags: <defaults>
</compile_context>

<pallas_src>
import jax
import jax.numpy as jnp
from jax.experimental import pallas as pl
from jax.experimental.pallas import tpu as pltpu

N_FEATURES = 16
HIDDEN_LAYER_SIZE = 128
NUM_MODULATION_TYPES = 3
OUT_ROWS = 16           # logits padded 3 -> 16 sublanes (one native bf16 tile row-group)
LANE = 128              # batch-lane granularity for the transposed layout
MAX_TM = 4096           # batch columns (lanes) processed per grid step


def _round_up(x, m):
    return ((x + m - 1) // m) * m


def _cdiv(a, b):
    return -(-a // b)


def _mlp_kernel(xT_ref, w1T_ref, b1_ref, w2T_ref, b2_ref, o_ref):
    # fc1: h^T = w1^T @ x^T  -> [128, TM]; bf16 MXU matmul, f32 accumulate.
    hT = jnp.dot(w1T_ref[...], xT_ref[...], preferred_element_type=jnp.float32)
    hT = jnp.maximum(hT + b1_ref[...], 0.0)          # bias + ReLU in f32 (VPU)
    # fc2: y^T = w2^T_pad @ h^T -> [16, TM]; bf16 MXU path, f32 accumulate.
    yT = jnp.dot(w2T_ref[...], hT.astype(jnp.bfloat16),
                 preferred_element_type=jnp.float32)
    o_ref[...] = (yT + b2_ref[...]).astype(o_ref.dtype)


def prepare_params(w1, b1, w2, b2):
    """Pack params once into the kernel's transposed / padded / bf16 layout.

    w1: [16, 128], b1: [128], w2: [128, 3], b2: [3]   (torch weight.T storage)
    """
    w1T = jnp.asarray(w1, jnp.float32).T.astype(jnp.bfloat16)           # [128, 16]
    b1c = jnp.asarray(b1, jnp.float32).reshape(HIDDEN_LAYER_SIZE, 1)    # [128, 1]
    w2T = jnp.zeros((OUT_ROWS, HIDDEN_LAYER_SIZE), jnp.bfloat16)        # [16, 128]
    w2T = w2T.at[:NUM_MODULATION_TYPES, :].set(
        jnp.asarray(w2, jnp.float32).T.astype(jnp.bfloat16))
    b2c = jnp.zeros((OUT_ROWS, 1), jnp.float32)                         # [16, 1]
    b2c = b2c.at[:NUM_MODULATION_TYPES, 0].set(jnp.asarray(b2, jnp.float32))
    return w1T, b1c, w2T, b2c


def signal_classifier_forward_packed(x, packed_params):
    """x: [B, 16] f32, packed_params from prepare_params(). Returns [B, 3] f32."""
    w1T, b1c, w2T, b2c = packed_params
    B = x.shape[0]

    # Batch (lane axis) padded to a multiple of 128. Pick the step width TM so
    # padding waste stays <= one 128-lane group per step, and use >= 2 grid
    # steps whenever the batch allows it (both v7x TensorCores get work).
    B_pad = _round_up(max(B, LANE), LANE)
    n_steps = _cdiv(B_pad, MAX_TM)
    if n_steps == 1 and B_pad >= 2 * LANE:
        n_steps = 2
    TM = _round_up(_cdiv(B_pad, n_steps), LANE)
    B_pad = TM * n_steps
    grid = (n_steps,)

    # Single fused wrapper pass over x: cast -> pad -> transpose.
    xT = jnp.pad(x.astype(jnp.bfloat16), ((0, B_pad - B), (0, 0))).T     # [16, B_pad]

    flops = 2 * B_pad * (N_FEATURES * HIDDEN_LAYER_SIZE
                         + HIDDEN_LAYER_SIZE * OUT_ROWS)
    bytes_accessed = (B_pad * N_FEATURES * 2            # x^T (bf16)
                      + B_pad * OUT_ROWS * 4            # y^T (f32)
                      + HIDDEN_LAYER_SIZE * N_FEATURES * 2
                      + OUT_ROWS * HIDDEN_LAYER_SIZE * 2
                      + HIDDEN_LAYER_SIZE * 4 + OUT_ROWS * 4)

    outT = pl.pallas_call(
        _mlp_kernel,
        out_shape=jax.ShapeDtypeStruct((OUT_ROWS, B_pad), jnp.float32),
        grid=grid,
        in_specs=[
            pl.BlockSpec((N_FEATURES, TM), lambda i: (0, i)),                # x^T tile
            pl.BlockSpec((HIDDEN_LAYER_SIZE, N_FEATURES), lambda i: (0, 0)), # w1^T (resident)
            pl.BlockSpec((HIDDEN_LAYER_SIZE, 1), lambda i: (0, 0)),          # b1   (resident)
            pl.BlockSpec((OUT_ROWS, HIDDEN_LAYER_SIZE), lambda i: (0, 0)),   # w2^T padded (resident)
            pl.BlockSpec((OUT_ROWS, 1), lambda i: (0, 0)),                   # b2 padded   (resident)
        ],
        out_specs=pl.BlockSpec((OUT_ROWS, TM), lambda i: (0, i)),
        compiler_params=pltpu.CompilerParams(
            dimension_semantics=("parallel",)),          # batch steps across TCs on v7x
        cost_estimate=pl.CostEstimate(
            flops=flops, transcendentals=0, bytes_accessed=bytes_accessed),
    )(xT, w1T, b1c, w2T, b2c)

    # Cheap XLA slice + small transpose back to [B, 3]; drops padded rows/cols.
    return outT[:NUM_MODULATION_TYPES, :B].T


def signal_classifier_forward(x, w1, b1, w2, b2):
    """Convenience wrapper; for repeated calls, hoist prepare_params() out."""
    return signal_classifier_forward_packed(x, prepare_params(w1, b1, w2, b2))


def init_params(key):
    """Init matching PyTorch nn.Linear default: U(-1/sqrt(fan_in), +1/sqrt(fan_in))."""
    k1, k2, k3, k4 = jax.random.split(key, 4)
    bound1 = 1.0 / jnp.sqrt(jnp.float32(N_FEATURES))
    bound2 = 1.0 / jnp.sqrt(jnp.float32(HIDDEN_LAYER_SIZE))
    # stored as [in, out] (transposed relative to torch's [out, in])
    w1 = jax.random.uniform(k1, (N_FEATURES, HIDDEN_LAYER_SIZE),
                            jnp.float32, -bound1, bound1)
    b1 = jax.random.uniform(k2, (HIDDEN_LAYER_SIZE,), jnp.float32, -bound1, bound1)
    w2 = jax.random.uniform(k3, (HIDDEN_LAYER_SIZE, NUM_MODULATION_TYPES),
                            jnp.float32, -bound2, bound2)
    b2 = jax.random.uniform(k4, (NUM_MODULATION_TYPES,), jnp.float32, -bound2, bound2)
    return w1, b1, w2, b2


def _ref_forward_bf16(x, w1, b1, w2, b2):
    """Reference emulating the kernel's bf16-input / f32-accumulate numerics."""
    xf = x.astype(jnp.bfloat16).astype(jnp.float32)
    w1f = w1.astype(jnp.bfloat16).astype(jnp.float32)
    w2f = w2.astype(jnp.bfloat16).astype(jnp.float32)
    h = jnp.maximum(xf @ w1f + b1, 0.0)
    h = h.astype(jnp.bfloat16).astype(jnp.float32)
    return h @ w2f + b2


if __name__ == "__main__":
    key = jax.random.PRNGKey(0)
    kx, kp = jax.random.split(key)
    w1, b1, w2, b2 = init_params(kp)
    packed = prepare_params(w1, b1, w2, b2)   # hoisted weight packing (done once)

    # Small deterministic batch (single grid step path).
    B = 8
    x = jax.random.normal(kx, (B, N_FEATURES), jnp.float32)
    logits = jax.block_until_ready(signal_classifier_forward(x, w1, b1, w2, b2))
    assert logits.shape == (B, NUM_MODULATION_TYPES)

    ref_bf = _ref_forward_bf16(x, w1, b1, w2, b2)
    ref_f32 = jnp.maximum(x @ w1 + b1, 0.0) @ w2 + b2
    assert jnp.allclose(logits, ref_bf, atol=1e-3, rtol=1e-3)     # matches kernel numerics
    assert jnp.allclose(logits, ref_f32, atol=3e-2, rtol=3e-2)    # close to pure-f32 math

    # Larger batch: exercises the multi-step grid, batch padding, and the
    # pre-packed-params path.
    B2 = 1000
    x2 = jax.random.normal(jax.random.PRNGKey(1), (B2, N_FEATURES), jnp.float32)
    logits2 = jax.block_until_ready(signal_classifier_forward_packed(x2, packed))
    assert logits2.shape == (B2, NUM_MODULATION_TYPES)
    ref2 = _ref_forward_bf16(x2, w1, b1, w2, b2)
    assert jnp.allclose(logits2, ref2, atol=1e-3, rtol=1e-3)

    print("KERNEL_OK")
</pallas_src>

<mosaic_0001>
module attributes {stable_mosaic.version = 11 : i64} {
  func.func @_mlp_kernel(%arg0: i32, %arg1: memref<16x128xbf16, #tpu.memory_space<vmem>>, %arg2: memref<128x16xbf16, #tpu.memory_space<vmem>>, %arg3: memref<128x1xf32, #tpu.memory_space<vmem>>, %arg4: memref<16x128xbf16, #tpu.memory_space<vmem>>, %arg5: memref<16x1xf32, #tpu.memory_space<vmem>>, %arg6: memref<16x128xf32, #tpu.memory_space<vmem>>) attributes {dimension_semantics = [#tpu.dimension_semantics<parallel>], iteration_bounds = array<i64: 1>, scalar_prefetch = 0 : i64, scratch_operands = 0 : i64, tpu.core_type = #tpu.core_type<tc>, window_params = [{transform_indices = @transform_0, window_bounds = array<i64: 16, 128>}, {pipeline_mode = #tpu.pipeline_mode<synchronous>, transform_indices = @transform_1, window_bounds = array<i64: 128, 16>}, {pipeline_mode = #tpu.pipeline_mode<synchronous>, transform_indices = @transform_2, window_bounds = array<i64: 128, 1>}, {pipeline_mode = #tpu.pipeline_mode<synchronous>, transform_indices = @transform_3, window_bounds = array<i64: 16, 128>}, {pipeline_mode = #tpu.pipeline_mode<synchronous>, transform_indices = @transform_4, window_bounds = array<i64: 16, 1>}, {transform_indices = @transform_5, window_bounds = array<i64: 16, 128>}]} {
    %c0 = arith.constant 0 : index
    %c0_0 = arith.constant 0 : index
    %0 = vector.load %arg2[%c0, %c0_0] : memref<128x16xbf16, #tpu.memory_space<vmem>>, vector<128x16xbf16>
    %c0_1 = arith.constant 0 : index
    %c0_2 = arith.constant 0 : index
    %1 = vector.load %arg1[%c0_1, %c0_2] : memref<16x128xbf16, #tpu.memory_space<vmem>>, vector<16x128xbf16>
    %cst = arith.constant dense<0.000000e+00> : vector<128x128xf32>
    %2 = tpu.matmul %0, %1, %cst {dimension_numbers = #tpu.dot_dimension_numbers<[1], [0], [0], [1], [0, 0, 1, 1], [], []>} : vector<128x16xbf16>, vector<16x128xbf16>, vector<128x128xf32> -> vector<128x128xf32>
    %c0_3 = arith.constant 0 : index
    %c0_4 = arith.constant 0 : index
    %3 = vector.load %arg3[%c0_3, %c0_4] : memref<128x1xf32, #tpu.memory_space<vmem>>, vector<128x1xf32>
    %4 = vector.broadcast %3 : vector<128x1xf32> to vector<128x128xf32>
    %5 = arith.addf %2, %4 : vector<128x128xf32>
    %cst_5 = arith.constant 0.000000e+00 : f32
    %6 = vector.broadcast %cst_5 : f32 to vector<128x128xf32>
    %7 = arith.maximumf %5, %6 : vector<128x128xf32>
    %c0_6 = arith.constant 0 : index
    %c0_7 = arith.constant 0 : index
    %8 = vector.load %arg4[%c0_6, %c0_7] : memref<16x128xbf16, #tpu.memory_space<vmem>>, vector<16x128xbf16>
    %9 = arith.truncf %7 : vector<128x128xf32> to vector<128x128xbf16>
    %cst_8 = arith.constant dense<0.000000e+00> : vector<16x128xf32>
    %10 = tpu.matmul %8, %9, %cst_8 {dimension_numbers = #tpu.dot_dimension_numbers<[1], [0], [0], [1], [0, 0, 1, 1], [], []>} : vector<16x128xbf16>, vector<128x128xbf16>, vector<16x128xf32> -> vector<16x128xf32>
    %c0_9 = arith.constant 0 : index
    %c0_10 = arith.constant 0 : index
    %11 = vector.load %arg5[%c0_9, %c0_10] : memref<16x1xf32, #tpu.memory_space<vmem>>, vector<16x1xf32>
    %12 = vector.broadcast %11 : vector<16x1xf32> to vector<16x128xf32>
    %13 = arith.addf %10, %12 : vector<16x128xf32>
    %c0_11 = arith.constant 0 : index
    %c0_12 = arith.constant 0 : index
    %14 = vector.load %arg6[%c0_11, %c0_12] : memref<16x128xf32, #tpu.memory_space<vmem>>, vector<16x128xf32>
    tpu.vector_store %arg6[%c0_11, %c0_12], %13 {strides = array<i32>} : memref<16x128xf32, #tpu.memory_space<vmem>>, vector<16x128xf32>,
    return
  }
  func.func @transform_0(%arg0: i32) -> (i32, i32) {
    %c0_i32 = arith.constant 0 : i32
    %c0_i32_0 = arith.constant 0 : i32
    return %c0_i32, %arg0 : i32, i32
  }
  func.func @transform_1(%arg0: i32) -> (i32, i32) {
    %c0_i32 = arith.constant 0 : i32
    %c0_i32_0 = arith.constant 0 : i32
    %c0_i32_1 = arith.constant 0 : i32
    return %c0_i32, %c0_i32_0 : i32, i32
  }
  func.func @transform_2(%arg0: i32) -> (i32, i32) {
    %c0_i32 = arith.constant 0 : i32
    %c0_i32_0 = arith.constant 0 : i32
    %c0_i32_1 = arith.constant 0 : i32
    return %c0_i32, %c0_i32_0 : i32, i32
  }
  func.func @transform_3(%arg0: i32) -> (i32, i32) {
    %c0_i32 = arith.constant 0 : i32
    %c0_i32_0 = arith.constant 0 : i32
    %c0_i32_1 = arith.constant 0 : i32
    return %c0_i32, %c0_i32_0 : i32, i32
  }
  func.func @transform_4(%arg0: i32) -> (i32, i32) {
    %c0_i32 = arith.constant 0 : i32
    %c0_i32_0 = arith.constant 0 : i32
    %c0_i32_1 = arith.constant 0 : i32
    return %c0_i32, %c0_i32_0 : i32, i32
  }
  func.func @transform_5(%arg0: i32) -> (i32, i32) {
    %c0_i32 = arith.constant 0 : i32
    %c0_i32_0 = arith.constant 0 : i32
    return %c0_i32, %arg0 : i32, i32
  }
}

</mosaic_0001>

<bundles_post_ra>
// kernel: tpu_custom_call.1
= control target key start
LH: loop header
LB: loop body
LE: loop exit
PB: predicated region body
PF: predicated region fallthrough
CT: control target
= control target key end

     0   :  { %v427_v2 = vmov 0   ;;  %vm182_vm0 = vcmask 130048   ;;  %s562_s0 = inlined_call_operand.vmem [shape: bf16[16,128], index: 0, kind: input, shape index: {}]   ;;  %s563_s1 = inlined_call_operand.vmem [shape: bf16[128,16], index: 1, kind: input, shape index: {}]   ;;  %s564_s2 = inlined_call_operand.vmem [shape: f32[128,1], index: 2, kind: input, shape index: {}]   ;;  %s565_s3 = inlined_call_operand.vmem [shape: bf16[16,128], index: 3, kind: input, shape index: {}]   ;;  %s566_s4 = inlined_call_operand.vmem [shape: f32[16,1], index: 4, kind: input, shape index: {}]   ;;  %s567_s5 = inlined_call_operand.hbm [shape: f32[16,128], index: 5, kind: output, shape index: {}]  }
   0x1   :  { %v54_v0 = vld [vmem:[%s564_s2 + $0x70] sm:$0xff]  ;;  %v390_v1 = vld [vmem:[%s562_s0] sm:$0xff]  ;;  %398 = vset.pattern.permute.xlu0 %v427_v2  ;;  %399 = vset.pattern.permute.xlu1 %v427_v2  ;;  %v385_v5 = vld [vmem:[%s563_s1 + $0x18] sm:$0xff] }
   0x2   :  { %v382_v3 = vld [vmem:[%s563_s1] sm:$0xff]  ;;  %128 = vperm.xlu0 %398, %v54_v0   ;;  %214 = vmatpush.bf16.msra.mxu0 %v390_v1  ;;  %v388_v6 = vld [vmem:[%s563_s1 + $0x30] sm:$0xff]  ;;  %v55_v8 = vld [vmem:[%s564_s2 + $0x78] sm:$0xff] }
   0x3   :  { %v52_v4 = vld [vmem:[%s564_s2 + $0x60] sm:$0xff]  ;;  %392 = vmatpush.bf16.msra.mxu2 %v390_v1  ;;  %393 = vmatpush.bf16.msra.mxu3 %v390_v1  ;;  %v50_v7 = vld [vmem:[%s564_s2 + $0x50] sm:$0xff] }
   0x4   :  { %118 = vperm.xlu1 %399, %v52_v4   ;;  %400 = vset.pattern.permute.xlu2 %v427_v2 }
   0x5   :  { %370 = vmatmul.msk.bf16.vlgmr.msra.gmra.mxu0 %vm182_vm0, %v382_v3  ;;  %108 = vperm.xlu2 %400, %v50_v7  }
   0x6   :  { %373 = vmatmul.msk.bf16.vlgmr.msra.gmra.mxu2 %vm182_vm0, %v385_v5  ;;  %376 = vmatmul.msk.bf16.vlgmr.msra.gmra.mxu3 %vm182_vm0, %v388_v6 }
   0x7   :  { %10 = vsyncpa [#allocation3], 0  ;;  %v53_v9 = vld [vmem:[%s564_s2 + $0x68] sm:$0xff]  ;;  %v51_v10 = vld [vmem:[%s564_s2 + $0x58] sm:$0xff]  ;;  %s428_s19 = smov [#allocation2]   ;;  %s322_s23 = sshll.u32 %s567_s5, 4  ;;  %s323_s23 = int_to_ptr.hbm [resolvable:$true] %s322_s23 }
   0x8   :  { %v48_v11 = vld [vmem:[%s564_s2 + $0x40] sm:$0xff]  ;;  %v383_v12 = vld [vmem:[%s563_s1 + $0x8] sm:$0xff]  ;;  %v389_v15 = vld [vmem:[%s563_s1 + $0x38] sm:$0xff]  ;;  %s320_s20 = sshll.u32 %s428_s19, 4  ;;  %s429_s24 = smov 128   ;;  %s321_s20 = int_to_ptr.vmem [resolvable:$true] %s320_s20 }
   0x9   :  { %v49_v13 = vld [vmem:[%s564_s2 + $0x48] sm:$0xff]  ;;  %v386_v14 = vld [vmem:[%s563_s1 + $0x20] sm:$0xff]  ;;  %v46_v16 = vld [vmem:[%s564_s2 + $0x30] sm:$0xff] }
   0xa   :  { %133 = vperm.xlu0 %398, %v55_v8   ;;  %v47_v17 = vld [vmem:[%s564_s2 + $0x38] sm:$0xff]  ;;  %v44_v18 = vld [vmem:[%s564_s2 + $0x20] sm:$0xff]  ;;  %v45_v19 = vld [vmem:[%s564_s2 + $0x28] sm:$0xff] }
   0xb   :  { %v42_v20 = vld [vmem:[%s564_s2 + $0x10] sm:$0xff]  ;;  %v43_v22 = vld [vmem:[%s564_s2 + $0x18] sm:$0xff]  ;;  %v387_v23 = vld [vmem:[%s563_s1 + $0x28] sm:$0xff] }
   0xc   :  { %123 = vperm.xlu1 %399, %v53_v9   ;;  %v384_v21 = vld [vmem:[%s563_s1 + $0x10] sm:$0xff]  ;;  %v40_v24 = vld [vmem:[%s564_s2] sm:$0xff]  ;;  %v41_v25 = vld [vmem:[%s564_s2 + $0x8] sm:$0xff] }
   0xd   :  { %113 = vperm.xlu2 %400, %v51_v10   ;;  %v282_v26 = vld [vmem:[%s566_s4] sm:$0xff]  ;;  %v283_v27 = vld [vmem:[%s566_s4 + $0x8] sm:$0xff] }
  0x12   :  { %98 = vperm.xlu0 %398, %v48_v11  }
  0x14   :  { %103 = vperm.xlu1 %399, %v49_v13  }
  0x15   :  { %371 = vmatmul.msk.bf16.gmra.mxu0 %vm182_vm0, %v383_v12  ;;  %88 = vperm.xlu2 %400, %v46_v16  }
  0x16   :  { %374 = vmatmul.msk.bf16.gmra.mxu2 %vm182_vm0, %v386_v14  ;;  %377 = vmatmul.msk.bf16.gmra.mxu3 %vm182_vm0, %v389_v15 }
  0x1a   :  { %93 = vperm.xlu0 %398, %v47_v17  }
  0x1c   :  { %78 = vperm.xlu1 %399, %v44_v18  }
  0x1d   :  { %83 = vperm.xlu2 %400, %v45_v19  }
  0x22   :  { %68 = vperm.xlu0 %398, %v42_v20  }
  0x24   :  { %73 = vperm.xlu1 %399, %v43_v22  }
  0x25   :  { %372 = vmatmul.msk.bf16.gmra.mxu0 %vm182_vm0, %v384_v21  ;;  %58 = vperm.xlu2 %400, %v40_v24  }
  0x26   :  { %375 = vmatmul.msk.bf16.gmra.mxu2 %vm182_vm0, %v387_v23 }
  0x2a   :  { %63 = vperm.xlu0 %398, %v41_v25  }
  0x2c   :  { %286 = vperm.xlu1 %399, %v282_v26  }
  0x2d   :  { %291 = vperm.xlu2 %400, %v283_v27  }
  0x5f   :  { %v109_v37 = vpop.permute.xlu2 %108 }
  0x67   :  { %v114_v49 = vpop.permute.xlu2 %113 }
  0x6f   :  { %v89_v60 = vpop.permute.xlu2 %88 }
  0x74   :  { %v129_v31 = vpop.permute.xlu0 %128 }
  0x76   :  { %v119_v35 = vpop.permute.xlu1 %118 }
  0x77   :  { %v84_v10 = vpop.permute.xlu2 %83 }
  0x7c   :  { %v134_v36 = vpop.permute.xlu0 %133 }
  0x7e   :  { %v124_v41 = vpop.permute.xlu1 %123 }
  0x7f   :  { %v59_v26 = vpop.permute.xlu2 %58 }
  0x82   :  { %v550_v28 = vpop.f32.mrf.mxu0 }
  0x84   :  { %v99_v42 = vpop.permute.xlu0 %98 }
  0x86   :  { %v104_v56 = vpop.permute.xlu1 %103 }
  0x89   :  { %v231_v29 = vpop.f32.mrf.mxu2  ;;  %v246_v30 = vpop.f32.mrf.mxu3 }
  0x8a   :  { %v552_v32 = vpop.f32.mrf.mxu0  ;;  %v247_v46 = vadd.f32 %v246_v30, %v119_v35  ;;  %v232_v12 = vadd.f32 %v231_v29, %v89_v60 }
  0x8c   :  { %v268_v53 = vmax.f32 %v247_v46, 0.0  ;;  %v94_v59 = vpop.permute.xlu0 %93  ;;  %v262_v17 = vmax.f32 %v232_v12, 0.0 }
  0x8e   :  { %v79_v2 = vpop.permute.xlu1 %78 }
  0x91   :  { %v233_v33 = vpop.f32.mrf.mxu2  ;;  %v248_v34 = vpop.f32.mrf.mxu3 }
  0x92   :  { %v221_v38 = vpop.f32.mrf.mxu0  ;;  %v249_v47 = vadd.f32 %v248_v34, %v124_v41  ;;  %v234_v7 = vadd.f32 %v233_v33, %v94_v59  ;;  %v217_v33 = vadd.f32 %v550_v28, %v59_v26  ;;  %v292_v28 = vpop.permute.xlu2 %291 }
  0x94   :  { %v269_v54 = vmax.f32 %v249_v47, 0.0  ;;  %v69_v6 = vpop.permute.xlu0 %68  ;;  %v263_v14 = vmax.f32 %v234_v7, 0.0 }
  0x95   :  { %v222_v20 = vadd.f32 %v221_v38, %v69_v6  ;;  %v391_v38 = vld [vmem:[%s565_s3] sm:$0xff]  ;;  %s430_s3 = smov 8  }
  0x96   :  { %v280_v58 = vpack.c.bf16 %v269_v54, %v268_v53  ;;  %v74_v19 = vpop.permute.xlu1 %73  ;;  %v277_v23 = vpack.c.bf16 %v263_v14, %v262_v17 }
  0x97   :  { %v258_v27 = vmax.f32 %v222_v20, 0.0 }
  0x99   :  { %v236_v39 = vpop.f32.mrf.mxu2  ;;  %v251_v40 = vpop.f32.mrf.mxu3 }
  0x9a   :  { %v252_v43 = vadd.f32 %v251_v40, %v129_v31  ;;  %v223_v50 = vpop.f32.mrf.mxu0  ;;  %v237_v3 = vadd.f32 %v236_v39, %v99_v42 }
  0x9b   :  { %v224_v21 = vadd.f32 %v223_v50, %v74_v19 }
  0x9c   :  { %v270_v51 = vmax.f32 %v252_v43, 0.0  ;;  %v264_v13 = vmax.f32 %v237_v3, 0.0  ;;  %v64_v24 = vpop.permute.xlu0 %63 }
  0x9d   :  { %v259_v30 = vmax.f32 %v224_v21, 0.0  ;;  %v219_v29 = vadd.f32 %v552_v32, %v64_v24 }
  0x9e   :  { %v287_v39 = vpop.permute.xlu1 %286 }
  0x9f   :  { %v257_v34 = vmax.f32 %v219_v29, 0.0  ;;  %v275_v35 = vpack.c.bf16 %v259_v30, %v258_v27 }
  0xa1   :  { %v238_v44 = vpop.f32.mrf.mxu2  ;;  %v253_v45 = vpop.f32.mrf.mxu3 }
  0xa2   :  { %v254_v48 = vadd.f32 %v253_v45, %v134_v36  ;;  %v226_v61 = vpop.f32.mrf.mxu0  ;;  %v239_v0 = vadd.f32 %v238_v44, %v104_v56  ;;  %v256_v36 = vmax.f32 %v217_v33, 0.0 }
  0xa3   :  { %v227_v18 = vadd.f32 %v226_v61, %v79_v2 }
  0xa4   :  { %v271_v52 = vmax.f32 %v254_v48, 0.0  ;;  %v265_v8 = vmax.f32 %v239_v0, 0.0 }
  0xa5   :  { %v260_v25 = vmax.f32 %v227_v18, 0.0 }
  0xa6   :  { %v281_v55 = vpack.c.bf16 %v271_v52, %v270_v51  ;;  %v278_v16 = vpack.c.bf16 %v265_v8, %v264_v13 }
  0xa8   :  { %300 = vmatpush.bf16.msra.mxu1 %v281_v55 }
  0xa9   :  { %v241_v57 = vpop.f32.mrf.mxu2 }
  0xaa   :  { %v242_v62 = vadd.f32 %v241_v57, %v109_v37  ;;  %v228_v11 = vpop.f32.mrf.mxu0  ;;  %v274_v37 = vpack.c.bf16 %v257_v34, %v256_v36 }
  0xab   :  { %v229_v15 = vadd.f32 %v228_v11, %v84_v10 }
  0xac   :  { %301 = vmatpush.bf16.msra.mxu1 %v280_v58  ;;  %v266_v4 = vmax.f32 %v242_v62, 0.0 }
  0xad   :  { %v261_v22 = vmax.f32 %v229_v15, 0.0 }
  0xaf   :  { %v276_v31 = vpack.c.bf16 %v261_v22, %v260_v25 }
  0xb1   :  { %v243_v63 = vpop.f32.mrf.mxu2 }
  0xb2   :  { %v244_v1 = vadd.f32 %v243_v63, %v114_v49 }
  0xb4   :  { %v267_v5 = vmax.f32 %v244_v1, 0.0 }
  0xb6   :  { %v279_v9 = vpack.c.bf16 %v267_v5, %v266_v4 }
  0xb8   :  { %302 = vmatpush.bf16.msra.mxu1 %v279_v9 }
  0xbc   :  { %303 = vmatpush.bf16.msra.mxu1 %v278_v16 }
  0xc0   :  { %304 = vmatpush.bf16.msra.mxu1 %v277_v23 }
  0xc4   :  { %305 = vmatpush.bf16.msra.mxu1 %v276_v31 }
  0xc8   :  { %306 = vmatpush.bf16.msra.mxu1 %v275_v35 }
  0xcc   :  { %307 = vmatpush.bf16.msra.mxu1 %v274_v37 }
  0xcf   :  { %308 = vmatmul.bf16.vlgmr.msra.gmra.mxu1 %v391_v38 }
 0x14c   :  { %v309_v40 = vpop.f32.mrf.mxu1 }
 0x14d   :  { %v310_v41 = vadd.f32 %v309_v40, %v287_v39 }
 0x14f   :  { %314 = vst [vmem:[#allocation2] sm:$0xff] %v310_v41 }
 0x154   :  { %v311_v32 = vpop.f32.mrf.mxu1 }
 0x155   :  { %v312_v42 = vadd.f32 %v311_v32, %v292_v28 }
 0x157   :  { %315 = vst [vmem:[#allocation2 + $0x8] sm:$0xff] %v312_v42 }
 0x158   :  { %328 = dma.vmem_to_hbm [thread:$0]  %s321_s20, 256, %s323_s23, [#allocation3], %s429_s24, %s429_s24, %s430_s3  }
 0x159   :  { %425 = dma.done.wait [#allocation3], 256  }
 0x15a   :  { %426 = vsyncadd [#allocation3], 4294967040 }
 0x15b   :  { %333 = vsyncpa [#allocation3], 1 }

</bundles_post_ra>
